<compile_context>
chip_gen: v5e
topology: v5e:2x2
jax: 0.10.0
libtpu: 0.0.40
codegen_flags: <defaults>
</compile_context>

<pallas_src>
import jax
import jax.numpy as jnp
from jax import lax
from jax.experimental import pallas as pl
from jax.experimental.pallas import tpu as pltpu

IN_FEATURES = 128
OUT_FEATURES = 16
TB_MAX = 1024  # max rows per batch tile (512 KiB f32 x-tile)


def linear_kernel(x_ref, w_ref, b_ref, o_ref):
    # x_ref: (TB, IN) f32, w_ref: (OUT, IN) f32, b_ref: (1, OUT) f32
    # Contract lane dim of both operands (x @ W^T) with f32 accumulation on the MXU.
    acc = lax.dot_general(
        x_ref[...], w_ref[...],
        dimension_numbers=(((1,), (1,)), ((), ())),
        preferred_element_type=jnp.float32,
    )
    o_ref[...] = (acc + b_ref[...]).astype(o_ref.dtype)


def linear_forward(x, weight, bias):
    """x: (B, 128) f32; weight: (16, 128) f32 (PyTorch layout); bias: (16,) f32."""
    B = x.shape[0]

    # Tile size: multiple of 8 rows (sublane constraint), capped at TB_MAX.
    TB = min(TB_MAX, max(8, ((B + 7) // 8) * 8))
    B_pad = ((B + TB - 1) // TB) * TB
    if B_pad != B:
        x = jnp.pad(x, ((0, B_pad - B), (0, 0)))

    b2d = bias.reshape(1, OUT_FEATURES)  # 2-D for TPU vreg layout
    grid = (B_pad // TB,)

    cost = pl.CostEstimate(
        flops=2 * B_pad * IN_FEATURES * OUT_FEATURES,
        transcendentals=0,
        bytes_accessed=4 * (B_pad * IN_FEATURES
                            + OUT_FEATURES * IN_FEATURES
                            + B_pad * OUT_FEATURES
                            + OUT_FEATURES),
    )

    out = pl.pallas_call(
        linear_kernel,
        out_shape=jax.ShapeDtypeStruct((B_pad, OUT_FEATURES), x.dtype),
        grid_spec=pltpu.PrefetchScalarGridSpec(
            num_scalar_prefetch=0,
            grid=grid,
            in_specs=[
                # x: one batch tile per grid step (pipelined / double-buffered).
                pl.BlockSpec((TB, IN_FEATURES), lambda i: (i, 0)),
                # weight & bias: constant index_map -> loaded once, VMEM-resident.
                pl.BlockSpec((OUT_FEATURES, IN_FEATURES), lambda i: (0, 0)),
                pl.BlockSpec((1, OUT_FEATURES), lambda i: (0, 0)),
            ],
            out_specs=pl.BlockSpec((TB, OUT_FEATURES), lambda i: (i, 0)),
        ),
        compiler_params=pltpu.CompilerParams(
            dimension_semantics=("parallel",),  # batch rows independent -> megacore on v7x
        ),
        cost_estimate=cost,
    )(x, weight, b2d)

    if B_pad != B:
        out = out[:B]
    return out


if __name__ == "__main__":
    key = jax.random.PRNGKey(0)
    kx, kw, kb, kx2 = jax.random.split(key, 4)

    # Deterministic parameter init (mirrors nn.Linear's uniform(-1/sqrt(in), 1/sqrt(in)))
    bound = 1.0 / (IN_FEATURES ** 0.5)
    weight = jax.random.uniform(
        kw, (OUT_FEATURES, IN_FEATURES), dtype=jnp.float32, minval=-bound, maxval=bound
    )
    bias = jax.random.uniform(
        kb, (OUT_FEATURES,), dtype=jnp.float32, minval=-bound, maxval=bound
    )

    # Small batch (module-consistent shape).
    B = 8
    x = jax.random.normal(kx, (B, IN_FEATURES), dtype=jnp.float32)
    y = jax.block_until_ready(linear_forward(x, weight, bias))
    y_ref = x @ weight.T + bias
    assert y.shape == (B, OUT_FEATURES)
    assert jnp.allclose(y, y_ref, atol=1e-5, rtol=1e-5)

    # Non-multiple-of-8 batch to exercise the pad-and-slice tail path.
    B2 = 13
    x2 = jax.random.normal(kx2, (B2, IN_FEATURES), dtype=jnp.float32)
    y2 = jax.block_until_ready(linear_forward(x2, weight, bias))
    y2_ref = x2 @ weight.T + bias
    assert y2.shape == (B2, OUT_FEATURES)
    assert jnp.allclose(y2, y2_ref, atol=1e-5, rtol=1e-5)

    print("KERNEL_OK")
</pallas_src>

<mosaic_0001>
module attributes {stable_mosaic.version = 11 : i64} {
  func.func @linear_kernel(%arg0: i32, %arg1: memref<8x128xf32, #tpu.memory_space<vmem>>, %arg2: memref<16x128xf32, #tpu.memory_space<vmem>>, %arg3: memref<1x16xf32, #tpu.memory_space<vmem>>, %arg4: memref<8x16xf32, #tpu.memory_space<vmem>>) attributes {dimension_semantics = [#tpu.dimension_semantics<parallel>], iteration_bounds = array<i64: 1>, scalar_prefetch = 0 : i64, scratch_operands = 0 : i64, tpu.core_type = #tpu.core_type<tc>, window_params = [{transform_indices = @transform_0, window_bounds = array<i64: 8, 128>}, {pipeline_mode = #tpu.pipeline_mode<synchronous>, transform_indices = @transform_1, window_bounds = array<i64: 16, 128>}, {pipeline_mode = #tpu.pipeline_mode<synchronous>, transform_indices = @transform_2, window_bounds = array<i64: 1, 16>}, {transform_indices = @transform_3, window_bounds = array<i64: 8, 16>}]} {
    %c0 = arith.constant 0 : index
    %c0_0 = arith.constant 0 : index
    %0 = vector.load %arg1[%c0, %c0_0] : memref<8x128xf32, #tpu.memory_space<vmem>>, vector<8x128xf32>
    %c0_1 = arith.constant 0 : index
    %c0_2 = arith.constant 0 : index
    %1 = vector.load %arg2[%c0_1, %c0_2] : memref<16x128xf32, #tpu.memory_space<vmem>>, vector<16x128xf32>
    %cst = arith.constant dense<0.000000e+00> : vector<8x16xf32>
    %2 = tpu.matmul %0, %1, %cst {dimension_numbers = #tpu.dot_dimension_numbers<[1], [1], [0], [0], [0, 0, 1, 0], [], []>} : vector<8x128xf32>, vector<16x128xf32>, vector<8x16xf32> -> vector<8x16xf32>
    %c0_3 = arith.constant 0 : index
    %c0_4 = arith.constant 0 : index
    %3 = vector.load %arg3[%c0_3, %c0_4] : memref<1x16xf32, #tpu.memory_space<vmem>>, vector<1x16xf32>
    %4 = vector.broadcast %3 : vector<1x16xf32> to vector<8x16xf32>
    %5 = arith.addf %2, %4 : vector<8x16xf32>
    %c0_5 = arith.constant 0 : index
    %c0_6 = arith.constant 0 : index
    %6 = vector.load %arg4[%c0_5, %c0_6] : memref<8x16xf32, #tpu.memory_space<vmem>>, vector<8x16xf32>
    tpu.vector_store %arg4[%c0_5, %c0_6], %5 {strides = array<i32>} : memref<8x16xf32, #tpu.memory_space<vmem>>, vector<8x16xf32>,
    return
  }
  func.func @transform_0(%arg0: i32) -> (i32, i32) {
    %c0_i32 = arith.constant 0 : i32
    %c0_i32_0 = arith.constant 0 : i32
    return %arg0, %c0_i32 : i32, i32
  }
  func.func @transform_1(%arg0: i32) -> (i32, i32) {
    %c0_i32 = arith.constant 0 : i32
    %c0_i32_0 = arith.constant 0 : i32
    %c0_i32_1 = arith.constant 0 : i32
    return %c0_i32, %c0_i32_0 : i32, i32
  }
  func.func @transform_2(%arg0: i32) -> (i32, i32) {
    %c0_i32 = arith.constant 0 : i32
    %c0_i32_0 = arith.constant 0 : i32
    %c0_i32_1 = arith.constant 0 : i32
    return %c0_i32, %c0_i32_0 : i32, i32
  }
  func.func @transform_3(%arg0: i32) -> (i32, i32) {
    %c0_i32 = arith.constant 0 : i32
    %c0_i32_0 = arith.constant 0 : i32
    return %arg0, %c0_i32 : i32, i32
  }
}

</mosaic_0001>

<bundles_post_ra>
// kernel: tpu_custom_call.1
= control target key start
LH: loop header
LB: loop body
LE: loop exit
PB: predicated region body
PF: predicated region fallthrough
CT: control target
= control target key end

     0   :  { %8 = vsyncpa [#allocation3], 0  ;;  %s213_s0 = inlined_call_operand.hbm [shape: f32[8,128], index: 0, kind: input, shape index: {}]   ;;  %s214_s1 = inlined_call_operand.hbm [shape: f32[16,128], index: 1, kind: input, shape index: {}]   ;;  %s215_s2 = inlined_call_operand.vmem [shape: f32[1,16], index: 2, kind: input, shape index: {}]   ;;  %s216_s3 = inlined_call_operand.hbm [shape: f32[8,16], index: 3, kind: output, shape index: {}]  }
   0x1   :  { %9 = vsyncpa [#allocation6], 0 }
   0x2   :  { %10 = vsyncpa [#allocation4], 0  ;;  %s16_s14 = sshll.u32 %s213_s0, 4  ;;  %s176_s15 = smov [#allocation2]   ;;  %s17_s14 = int_to_ptr.hbm [resolvable:$true] %s16_s14 }
   0x3   :  { %s18_s16 = sshll.u32 %s176_s15, 4  ;;  %s26_s19 = sshll.u32 %s214_s1, 4  ;;  %s19_s16 = int_to_ptr.vmem [resolvable:$true] %s18_s16  ;;  %s27_s19 = int_to_ptr.hbm [resolvable:$true] %s26_s19 }
   0x4   :  { %21 = dma.hbm_to_vmem [thread:$0]  %s17_s14, 128, %s19_s16, [#allocation3]  }
   0x5   :  { %s177_s20 = smov [#allocation5]   ;;  %s178_s22 = smov 128  }
   0x6   :  { %s28_s21 = sshll.u32 %s177_s20, 4  ;;  %s179_s23 = smov 8   ;;  %s29_s21 = int_to_ptr.vmem [resolvable:$true] %s28_s21 }
   0x7   :  { %34 = dma.hbm_to_vmem [thread:$0]  %s27_s19, 256, %s29_s21, [#allocation6], %s178_s22, %s178_s22, %s179_s23  }
   0x8   :  { %170 = dma.done.wait [#allocation3], 128  }
   0x9   :  { %171 = vsyncadd [#allocation3], 4294967168 }
   0xa   :  { %172 = dma.done.wait [#allocation6], 256  }
   0xb   :  { %173 = vsyncadd [#allocation6], 4294967040  ;;  %v47_v0 = vld [vmem:[#allocation5 + $0x8] sm:$0xff]  ;;  %v46_v1 = vld [vmem:[#allocation5] sm:$0xff]  ;;  %s180_s24 = smov [#allocation7]   ;;  %s81_s28 = sshll.u32 %s216_s3, 4  ;;  %s82_s28 = int_to_ptr.hbm [resolvable:$true] %s81_s28 }
   0xc   :  { %66 = vmatpush.xpose.msra.mxu0 %v47_v0  ;;  %v45_v2 = vld [vmem:[#allocation2] sm:$0xff]  ;;  %s79_s25 = sshll.u32 %s180_s24, 4  ;;  %vm72_vm0 = vcmask 130048   ;;  %s80_s25 = int_to_ptr.vmem [resolvable:$true] %s79_s25 }
   0xd   :  { %v97_v3 = vld [vmem:[%s215_s2] ss:$0 sm:$0xff] }
  0x10   :  { %67 = vmatpush.xpose.msra.mxu0 %v46_v1 }
  0x13   :  { %68 = vmatmul.f32.vlgmr.msra.gmra.mxu0 %v45_v2 }
  0x90   :  { %v69_v4 = vpop.f32.mrf.mxu0 }
  0x91   :  { %v70_v5 = vadd.f32 %v97_v3, %v69_v4 }
  0x93   :  { %73 = vst.msk [vmem:[#allocation7] sm:$0xff] %vm72_vm0, %v70_v5 }
  0x94   :  { %84 = dma.vmem_to_hbm [thread:$0]  %s80_s25, 128, %s82_s28, [#allocation4]  }
  0x95   :  { %174 = dma.done.wait [#allocation4], 128  }
  0x96   :  { %175 = vsyncadd [#allocation4], 4294967168 }
  0x97   :  { %89 = vsyncpa [#allocation3], 1 }
  0x98   :  { %90 = vsyncpa [#allocation6], 1 }
  0x99   :  { %91 = vsyncpa [#allocation4], 1 }

</bundles_post_ra>
